<compile_context>
chip_gen: v7x
topology: tpu7x:2x2x1
jax: 0.10.0
libtpu: 0.0.40
codegen_flags: <defaults>
</compile_context>

<pallas_src>
import functools

import jax
import jax.numpy as jnp
from jax.experimental import pallas as pl
from jax.experimental.pallas import tpu as pltpu


# --------------------------------------------------------------------------
# Stage 1: fused per-head Q/K/V projection (one MXU dot per step).
# --------------------------------------------------------------------------
def _qkv_proj_kernel(x_ref, w_ref, q_ref, k_ref, v_ref, *, dim_head):
    """x_ref: (1, tp, Dq); w_ref: (1, Dq, 3*Dh) columns = [q*scale | k | v];
    q/k/v_ref: (1, 1, tp, Dh) blocks of the head-major (B, H, N, Dh) outputs."""
    y = jnp.dot(x_ref[0], w_ref[0], preferred_element_type=jnp.float32)  # (tp, 3*Dh)
    q_ref[0, 0] = y[:, :dim_head].astype(q_ref.dtype)
    k_ref[0, 0] = y[:, dim_head:2 * dim_head].astype(k_ref.dtype)
    v_ref[0, 0] = y[:, 2 * dim_head:].astype(v_ref.dtype)


# --------------------------------------------------------------------------
# Stage 2: flash attention (online softmax) + fused output projection.
# --------------------------------------------------------------------------
def _flash_attn_kernel(q_ref, k_ref, v_ref, wo_ref, bo_ref, o_ref,
                       m_s, l_s, acc_s, y_s, *, heads_per_step):
    """One (batch, q-tile, head-group, kv-tile) step.

    q_ref : (1, hg, tq, Dh)   pre-projected, pre-scaled queries
    k_ref : (1, hg, tk, Dh)   pre-projected keys
    v_ref : (1, hg, tk, Dh)   pre-projected values
    wo_ref: (1, hg, Dh, Dq)   this head-group's slice of the output projection
    bo_ref: (1, Dq)           output projection bias
    o_ref : (1, tq, Dq)       output tile (revisited across group/kv axes)
    scratch (f32): m_s/l_s (hg,tq,1), acc_s (hg,tq,Dh), y_s (tq,Dq)
    """
    g = pl.program_id(2)
    ki = pl.program_id(3)
    ng = pl.num_programs(2)
    nk = pl.num_programs(3)

    @pl.when(ki == 0)
    def _init():
        m_s[...] = jnp.full_like(m_s, -jnp.inf)
        l_s[...] = jnp.zeros_like(l_s)
        acc_s[...] = jnp.zeros_like(acc_s)

    q = q_ref[0]                      # (hg, tq, Dh) -- input dtype (bf16 MXU path)
    k = k_ref[0]                      # (hg, tk, Dh)
    v = v_ref[0]                      # (hg, tk, Dh)

    # Batched (over the packed heads) Q.K^T; accumulation in f32.
    s = jnp.einsum('hqd,hkd->hqk', q, k,
                   preferred_element_type=jnp.float32)       # (hg, tq, tk)

    # TODO(synk): optional `mask` argument of the PyTorch module is not
    # implemented (forward is exercised with mask=None).

    m_prev = m_s[...]
    m_new = jnp.maximum(m_prev, jnp.max(s, axis=-1, keepdims=True))
    alpha = jnp.exp(m_prev - m_new)
    p = jnp.exp(s - m_new)
    l_s[...] = alpha * l_s[...] + jnp.sum(p, axis=-1, keepdims=True)
    acc_s[...] = alpha * acc_s[...] + jnp.einsum(
        'hqk,hkd->hqd', p.astype(v.dtype), v,
        preferred_element_type=jnp.float32)
    m_s[...] = m_new

    @pl.when(ki == nk - 1)
    def _finalize():
        # Exact normalization (once per (b, qi, g) -- negligible cost).
        out_h = acc_s[...] / l_s[...]                         # (hg, tq, Dh) f32
        wdt = wo_ref.dtype
        # Apply this group's slice of the output projection and accumulate
        # across head groups in VMEM (no concatenation of head outputs).
        contrib = jnp.dot(out_h[0].astype(wdt), wo_ref[0, 0],
                          preferred_element_type=jnp.float32)
        for i in range(1, heads_per_step):
            contrib = contrib + jnp.dot(out_h[i].astype(wdt), wo_ref[0, i],
                                        preferred_element_type=jnp.float32)

        @pl.when(g == 0)
        def _():
            y_s[...] = contrib + bo_ref[...].astype(jnp.float32)

        @pl.when(g > 0)
        def _():
            y_s[...] = y_s[...] + contrib

        @pl.when(g == ng - 1)
        def _():
            o_ref[0] = y_s[...].astype(o_ref.dtype)


# --------------------------------------------------------------------------
# Helpers.
# --------------------------------------------------------------------------
def _vmem_capacity_bytes():
    try:
        return int(pltpu.get_tpu_info().vmem_capacity_bytes)
    except Exception:
        return 128 << 20  # v5e/v6e default


def _pick_seq_tile(n, sublane, target):
    """Largest divisor of n that is <= target and a multiple of `sublane`;
    falls back to the full extent (always a legal block)."""
    if n <= target:
        return n
    for t in range(target, sublane - 1, -1):
        if n % t == 0 and t % sublane == 0:
            return t
    return n


def _pick_head_group(heads, dim_head):
    """Largest divisor of `heads` such that the packed tile hg*Dh fits in 128 lanes."""
    best = 1
    for c in range(1, heads + 1):
        if heads % c == 0 and c * dim_head <= 128:
            best = c
    return best


def _rup(x, m):
    return ((x + m - 1) // m) * m


def _padded_bytes(shape, itemsize):
    s = list(shape)
    while len(s) < 2:
        s.insert(0, 1)
    lead = 1
    for d in s[:-2]:
        lead *= int(d)
    return lead * _rup(int(s[-2]), 8) * _rup(int(s[-1]), 128) * itemsize


# --------------------------------------------------------------------------
# Wrapper.
# --------------------------------------------------------------------------
def attention_pallas(x, wq, wkv, wo, bo, *, heads, dim_head):
    B, N, Dq = x.shape
    inner = heads * dim_head
    scale = dim_head ** -0.5
    dtype = x.dtype
    itemsize = jnp.dtype(dtype).itemsize
    sublane = 8 if itemsize >= 4 else (16 if itemsize == 2 else 32)

    vmem_cap = _vmem_capacity_bytes()
    # 128-MiB-VMEM generations (v5e/v6e) take bigger tiles; v7x (64 MiB) stays at 256.
    seq_target = 512 if vmem_cap >= (100 << 20) else 256

    # ---------------- Stage 1: Q/K/V projection ----------------
    wq_h = wq.reshape(Dq, heads, dim_head)
    wk_h = wkv[:, :inner].reshape(Dq, heads, dim_head)
    wv_h = wkv[:, inner:].reshape(Dq, heads, dim_head)
    # Per-head fused weight, softmax scale folded into the Q columns.
    w_fused = jnp.transpose(
        jnp.concatenate([wq_h * scale, wk_h, wv_h], axis=-1), (1, 0, 2)
    ).astype(dtype)                                            # (H, Dq, 3*Dh)

    tp = _pick_seq_tile(N, sublane, seq_target)
    nt = N // tp
    qkv_sds = jax.ShapeDtypeStruct((B, heads, N, dim_head), dtype)

    q4, k4, v4 = pl.pallas_call(
        functools.partial(_qkv_proj_kernel, dim_head=dim_head),
        out_shape=(qkv_sds, qkv_sds, qkv_sds),
        grid_spec=pltpu.PrefetchScalarGridSpec(
            num_scalar_prefetch=0,
            grid=(B, nt, heads),
            in_specs=[
                pl.BlockSpec((1, tp, Dq), lambda b, ti, h: (b, ti, 0)),
                pl.BlockSpec((1, Dq, 3 * dim_head), lambda b, ti, h: (h, 0, 0)),
            ],
            out_specs=[
                pl.BlockSpec((1, 1, tp, dim_head), lambda b, ti, h: (b, h, ti, 0)),
                pl.BlockSpec((1, 1, tp, dim_head), lambda b, ti, h: (b, h, ti, 0)),
                pl.BlockSpec((1, 1, tp, dim_head), lambda b, ti, h: (b, h, ti, 0)),
            ],
        ),
        compiler_params=pltpu.CompilerParams(
            dimension_semantics=("parallel", "parallel", "parallel")),
    )(x, w_fused)

    # ---------------- Stage 2: flash attention + output projection ----------------
    hg = _pick_head_group(heads, dim_head)
    n_groups = heads // hg
    wo4 = wo.reshape(heads, dim_head, Dq).reshape(
        n_groups, hg, dim_head, Dq).astype(dtype)              # (Hg, hg, Dh, Dq)
    bo2 = bo.reshape(1, Dq)

    # Keep hg*tq (and the score matrix) bounded when many heads are packed.
    tq_target = max(sublane, min(seq_target, max(128, 512 // hg)))
    tq = _pick_seq_tile(N, sublane, tq_target)
    tk = _pick_seq_tile(N, sublane, seq_target)
    # v7x has 2 TensorCores: keep the 'parallel' extent B*nq >= 2 when possible.
    if B * (N // tq) < 2 and tq % (2 * sublane) == 0:
        tq //= 2
    nq, nk = N // tq, N // tk

    # Real double-buffered block + scratch VMEM footprint, with headroom,
    # capped at 75% of physical VMEM (≈48 MiB on v7x, ≈96 MiB on v5e/v6e).
    w_isz = jnp.dtype(wo4.dtype).itemsize
    blocks = [
        ((1, hg, tq, dim_head), itemsize),   # q
        ((1, hg, tk, dim_head), itemsize),   # k
        ((1, hg, tk, dim_head), itemsize),   # v
        ((1, hg, dim_head, Dq), w_isz),      # wo
        ((1, Dq), jnp.dtype(bo2.dtype).itemsize),
        ((1, tq, Dq), itemsize),             # out
    ]
    scratch = [
        ((hg, tq, 1), 4), ((hg, tq, 1), 4),
        ((hg, tq, dim_head), 4), ((tq, Dq), 4),
        ((hg, tq, tk), 4),                   # score-matrix temporary headroom
    ]
    est = (2 * sum(_padded_bytes(s, b) for s, b in blocks)
           + sum(_padded_bytes(s, b) for s, b in scratch))
    vmem_limit = int(min(0.75 * vmem_cap, 2 * est + (16 << 20)))

    kernel = functools.partial(_flash_attn_kernel, heads_per_step=hg)
    return pl.pallas_call(
        kernel,
        out_shape=jax.ShapeDtypeStruct((B, N, Dq), dtype),
        grid_spec=pltpu.PrefetchScalarGridSpec(
            num_scalar_prefetch=0,
            grid=(B, nq, n_groups, nk),
            in_specs=[
                pl.BlockSpec((1, hg, tq, dim_head),
                             lambda b, qi, g, ki: (b, g, qi, 0)),
                pl.BlockSpec((1, hg, tk, dim_head),
                             lambda b, qi, g, ki: (b, g, ki, 0)),
                pl.BlockSpec((1, hg, tk, dim_head),
                             lambda b, qi, g, ki: (b, g, ki, 0)),
                pl.BlockSpec((1, hg, dim_head, Dq),
                             lambda b, qi, g, ki: (g, 0, 0, 0)),
                pl.BlockSpec((1, Dq), lambda b, qi, g, ki: (0, 0)),
            ],
            out_specs=pl.BlockSpec((1, tq, Dq), lambda b, qi, g, ki: (b, qi, 0)),
            scratch_shapes=[
                pltpu.VMEM((hg, tq, 1), jnp.float32),          # m_s
                pltpu.VMEM((hg, tq, 1), jnp.float32),          # l_s
                pltpu.VMEM((hg, tq, dim_head), jnp.float32),   # acc_s
                pltpu.VMEM((tq, Dq), jnp.float32),             # y_s
            ],
        ),
        compiler_params=pltpu.CompilerParams(
            dimension_semantics=("parallel", "parallel",
                                 "arbitrary", "arbitrary"),
            vmem_limit_bytes=vmem_limit),
    )(q4, k4, v4, wo4, bo2)


# --------------------------------------------------------------------------
# Pure-JAX reference mirroring the PyTorch forward (mask=None, DropPath=Identity).
# --------------------------------------------------------------------------
def attention_ref(x, wq, wkv, wo, bo, *, heads, dim_head):
    B, N, Dq = x.shape
    inner = heads * dim_head
    scale = dim_head ** -0.5
    q = x @ wq
    kv = x @ wkv
    k, v = kv[..., :inner], kv[..., inner:]

    def split(t):  # b n (h d) -> (b h) n d
        return t.reshape(B, N, heads, dim_head).transpose(0, 2, 1, 3).reshape(
            B * heads, N, dim_head)

    q, k, v = map(split, (q, k, v))
    sim = jnp.einsum('bid,bjd->bij', q, k) * scale
    attn = jax.nn.softmax(sim, axis=-1)
    out = jnp.einsum('bij,bjd->bid', attn, v)
    out = out.reshape(B, heads, N, dim_head).transpose(0, 2, 1, 3).reshape(
        B, N, inner)
    return out @ wo + bo


if __name__ == "__main__":
    # Small shapes consistent with the module.
    B, N = 2, 8
    query_dim = 32
    heads, dim_head = 2, 16
    inner = heads * dim_head

    key = jax.random.PRNGKey(0)
    kx, kq, kkv, kwo, kbo = jax.random.split(key, 5)

    x = jax.random.normal(kx, (B, N, query_dim), dtype=jnp.float32)
    # Deterministic synthetic parameters (stored as (in, out) = PyTorch weight^T).
    wq = jax.random.normal(kq, (query_dim, inner), dtype=jnp.float32) * 0.05
    wkv = jax.random.normal(kkv, (query_dim, 2 * inner), dtype=jnp.float32) * 0.05
    wo = jax.random.normal(kwo, (inner, query_dim), dtype=jnp.float32) * 0.05
    bo = jax.random.normal(kbo, (query_dim,), dtype=jnp.float32) * 0.05

    attn_fn = jax.jit(functools.partial(attention_pallas,
                                        heads=heads, dim_head=dim_head))
    out = jax.block_until_ready(attn_fn(x, wq, wkv, wo, bo))

    ref = attention_ref(x, wq, wkv, wo, bo, heads=heads, dim_head=dim_head)
    assert out.shape == (B, N, query_dim), "bad output shape"
    assert jnp.allclose(out, ref, atol=2e-3, rtol=2e-3), "mismatch vs reference"

    print("KERNEL_OK")
</pallas_src>

<mosaic_0001>
module attributes {stable_mosaic.version = 11 : i64} {
  func.func @_qkv_proj_kernel(%arg0: i32, %arg1: i32, %arg2: i32, %arg3: memref<1x8x32xf32, #tpu.memory_space<vmem>>, %arg4: memref<1x32x48xf32, #tpu.memory_space<vmem>>, %arg5: memref<1x1x8x16xf32, #tpu.memory_space<vmem>>, %arg6: memref<1x1x8x16xf32, #tpu.memory_space<vmem>>, %arg7: memref<1x1x8x16xf32, #tpu.memory_space<vmem>>) attributes {dimension_semantics = [#tpu.dimension_semantics<parallel>, #tpu.dimension_semantics<parallel>, #tpu.dimension_semantics<parallel>], iteration_bounds = array<i64: 2, 1, 2>, scalar_prefetch = 0 : i64, scratch_operands = 0 : i64, tpu.core_type = #tpu.core_type<tc>, window_params = [{transform_indices = @transform_0, window_bounds = array<i64: 1, 8, 32>}, {transform_indices = @transform_1, window_bounds = array<i64: 1, 32, 48>}, {transform_indices = @transform_2, window_bounds = array<i64: 1, 1, 8, 16>}, {transform_indices = @transform_3, window_bounds = array<i64: 1, 1, 8, 16>}, {transform_indices = @transform_4, window_bounds = array<i64: 1, 1, 8, 16>}]} {
    %c0 = arith.constant 0 : index
    %c0_0 = arith.constant 0 : index
    %c0_1 = arith.constant 0 : index
    %0 = vector.load %arg3[%c0, %c0_0, %c0_1] : memref<1x8x32xf32, #tpu.memory_space<vmem>>, vector<1x8x32xf32>
    %1 = vector.shape_cast %0 : vector<1x8x32xf32> to vector<8x32xf32>
    %c0_2 = arith.constant 0 : index
    %c0_3 = arith.constant 0 : index
    %c0_4 = arith.constant 0 : index
    %2 = vector.load %arg4[%c0_2, %c0_3, %c0_4] : memref<1x32x48xf32, #tpu.memory_space<vmem>>, vector<1x32x48xf32>
    %3 = vector.shape_cast %2 : vector<1x32x48xf32> to vector<32x48xf32>
    %cst = arith.constant dense<0.000000e+00> : vector<8x48xf32>
    %4 = tpu.matmul %1, %3, %cst {dimension_numbers = #tpu.dot_dimension_numbers<[1], [0], [0], [1], [0, 0, 1, 1], [], []>} : vector<8x32xf32>, vector<32x48xf32>, vector<8x48xf32> -> vector<8x48xf32>
    %5 = vector.extract_strided_slice %4 {offsets = [0, 0], sizes = [8, 16], strides = [1, 1]} : vector<8x48xf32> to vector<8x16xf32>
    %c0_5 = arith.constant 0 : index
    %c0_6 = arith.constant 0 : index
    %c0_7 = arith.constant 0 : index
    %c0_8 = arith.constant 0 : index
    %6 = vector.load %arg5[%c0_5, %c0_6, %c0_7, %c0_8] : memref<1x1x8x16xf32, #tpu.memory_space<vmem>>, vector<1x1x8x16xf32>
    %7 = vector.shape_cast %6 : vector<1x1x8x16xf32> to vector<8x16xf32>
    %8 = vector.shape_cast %5 : vector<8x16xf32> to vector<1x1x8x16xf32>
    tpu.vector_store %arg5[%c0_5, %c0_6, %c0_7, %c0_8], %8 {strides = array<i32>} : memref<1x1x8x16xf32, #tpu.memory_space<vmem>>, vector<1x1x8x16xf32>,
    %9 = vector.extract_strided_slice %4 {offsets = [0, 16], sizes = [8, 16], strides = [1, 1]} : vector<8x48xf32> to vector<8x16xf32>
    %c0_9 = arith.constant 0 : index
    %c0_10 = arith.constant 0 : index
    %c0_11 = arith.constant 0 : index
    %c0_12 = arith.constant 0 : index
    %10 = vector.load %arg6[%c0_9, %c0_10, %c0_11, %c0_12] : memref<1x1x8x16xf32, #tpu.memory_space<vmem>>, vector<1x1x8x16xf32>
    %11 = vector.shape_cast %10 : vector<1x1x8x16xf32> to vector<8x16xf32>
    %12 = vector.shape_cast %9 : vector<8x16xf32> to vector<1x1x8x16xf32>
    tpu.vector_store %arg6[%c0_9, %c0_10, %c0_11, %c0_12], %12 {strides = array<i32>} : memref<1x1x8x16xf32, #tpu.memory_space<vmem>>, vector<1x1x8x16xf32>,
    %13 = vector.extract_strided_slice %4 {offsets = [0, 32], sizes = [8, 16], strides = [1, 1]} : vector<8x48xf32> to vector<8x16xf32>
    %c0_13 = arith.constant 0 : index
    %c0_14 = arith.constant 0 : index
    %c0_15 = arith.constant 0 : index
    %c0_16 = arith.constant 0 : index
    %14 = vector.load %arg7[%c0_13, %c0_14, %c0_15, %c0_16] : memref<1x1x8x16xf32, #tpu.memory_space<vmem>>, vector<1x1x8x16xf32>
    %15 = vector.shape_cast %14 : vector<1x1x8x16xf32> to vector<8x16xf32>
    %16 = vector.shape_cast %13 : vector<8x16xf32> to vector<1x1x8x16xf32>
    tpu.vector_store %arg7[%c0_13, %c0_14, %c0_15, %c0_16], %16 {strides = array<i32>} : memref<1x1x8x16xf32, #tpu.memory_space<vmem>>, vector<1x1x8x16xf32>,
    return
  }
  func.func @transform_0(%arg0: i32, %arg1: i32, %arg2: i32) -> (i32, i32, i32) {
    %c0_i32 = arith.constant 0 : i32
    %c0_i32_0 = arith.constant 0 : i32
    return %arg0, %arg1, %c0_i32 : i32, i32, i32
  }
  func.func @transform_1(%arg0: i32, %arg1: i32, %arg2: i32) -> (i32, i32, i32) {
    %c0_i32 = arith.constant 0 : i32
    %c0_i32_0 = arith.constant 0 : i32
    %c0_i32_1 = arith.constant 0 : i32
    return %arg2, %c0_i32, %c0_i32_0 : i32, i32, i32
  }
  func.func @transform_2(%arg0: i32, %arg1: i32, %arg2: i32) -> (i32, i32, i32, i32) {
    %c0_i32 = arith.constant 0 : i32
    %c0_i32_0 = arith.constant 0 : i32
    return %arg0, %arg2, %arg1, %c0_i32 : i32, i32, i32, i32
  }
  func.func @transform_3(%arg0: i32, %arg1: i32, %arg2: i32) -> (i32, i32, i32, i32) {
    %c0_i32 = arith.constant 0 : i32
    %c0_i32_0 = arith.constant 0 : i32
    return %arg0, %arg2, %arg1, %c0_i32 : i32, i32, i32, i32
  }
  func.func @transform_4(%arg0: i32, %arg1: i32, %arg2: i32) -> (i32, i32, i32, i32) {
    %c0_i32 = arith.constant 0 : i32
    %c0_i32_0 = arith.constant 0 : i32
    return %arg0, %arg2, %arg1, %c0_i32 : i32, i32, i32, i32
  }
}

module attributes {stable_mosaic.version = 11 : i64} {
  func.func @_flash_attn_kernel(%arg0: i32, %arg1: i32, %arg2: i32, %arg3: i32, %arg4: memref<1x2x8x16xf32, #tpu.memory_space<vmem>>, %arg5: memref<1x2x8x16xf32, #tpu.memory_space<vmem>>, %arg6: memref<1x2x8x16xf32, #tpu.memory_space<vmem>>, %arg7: memref<1x2x16x32xf32, #tpu.memory_space<vmem>>, %arg8: memref<1x32xf32, #tpu.memory_space<vmem>>, %arg9: memref<1x8x32xf32, #tpu.memory_space<vmem>>, %arg10: memref<2x8x1xf32, #tpu.memory_space<vmem>>, %arg11: memref<2x8x1xf32, #tpu.memory_space<vmem>>, %arg12: memref<2x8x16xf32, #tpu.memory_space<vmem>>, %arg13: memref<8x32xf32, #tpu.memory_space<vmem>>) attributes {dimension_semantics = [#tpu.dimension_semantics<parallel>, #tpu.dimension_semantics<parallel>, #tpu.dimension_semantics<arbitrary>, #tpu.dimension_semantics<arbitrary>], iteration_bounds = array<i64: 2, 1, 1, 1>, scalar_prefetch = 0 : i64, scratch_operands = 4 : i64, tpu.core_type = #tpu.core_type<tc>, window_params = [{transform_indices = @transform_0, window_bounds = array<i64: 1, 2, 8, 16>}, {transform_indices = @transform_1, window_bounds = array<i64: 1, 2, 8, 16>}, {transform_indices = @transform_2, window_bounds = array<i64: 1, 2, 8, 16>}, {transform_indices = @transform_3, window_bounds = array<i64: 1, 2, 16, 32>}, {pipeline_mode = #tpu.pipeline_mode<synchronous>, transform_indices = @transform_4, window_bounds = array<i64: 1, 32>}, {transform_indices = @transform_5, window_bounds = array<i64: 1, 8, 32>}]} {
    %c0_i32 = arith.constant 0 : i32
    %0 = arith.cmpi eq, %arg3, %c0_i32 : i32
    %1 = arith.extui %0 : i1 to i32
    %c0_i32_0 = arith.constant 0 : i32
    %2 = arith.cmpi ne, %1, %c0_i32_0 : i32
    scf.if %2 {
      %cst_35 = arith.constant 0xFF800000 : f32
      %35 = vector.broadcast %cst_35 : f32 to vector<2x8x1xf32>
      %c0_36 = arith.constant 0 : index
      %c0_37 = arith.constant 0 : index
      %c0_38 = arith.constant 0 : index
      %36 = vector.load %arg10[%c0_36, %c0_37, %c0_38] : memref<2x8x1xf32, #tpu.memory_space<vmem>>, vector<2x8x1xf32>
      tpu.vector_store %arg10[%c0_36, %c0_37, %c0_38], %35 {strides = array<i32>} : memref<2x8x1xf32, #tpu.memory_space<vmem>>, vector<2x8x1xf32>,
      %cst_39 = arith.constant 0.000000e+00 : f32
      %37 = vector.broadcast %cst_39 : f32 to vector<2x8x1xf32>
      %c0_40 = arith.constant 0 : index
      %c0_41 = arith.constant 0 : index
      %c0_42 = arith.constant 0 : index
      %38 = vector.load %arg11[%c0_40, %c0_41, %c0_42] : memref<2x8x1xf32, #tpu.memory_space<vmem>>, vector<2x8x1xf32>
      tpu.vector_store %arg11[%c0_40, %c0_41, %c0_42], %37 {strides = array<i32>} : memref<2x8x1xf32, #tpu.memory_space<vmem>>, vector<2x8x1xf32>,
      %cst_43 = arith.constant 0.000000e+00 : f32
      %39 = vector.broadcast %cst_43 : f32 to vector<2x8x16xf32>
      %c0_44 = arith.constant 0 : index
      %c0_45 = arith.constant 0 : index
      %c0_46 = arith.constant 0 : index
      %40 = vector.load %arg12[%c0_44, %c0_45, %c0_46] : memref<2x8x16xf32, #tpu.memory_space<vmem>>, vector<2x8x16xf32>
      tpu.vector_store %arg12[%c0_44, %c0_45, %c0_46], %39 {strides = array<i32>} : memref<2x8x16xf32, #tpu.memory_space<vmem>>, vector<2x8x16xf32>,
    } else {
    }
    %c0 = arith.constant 0 : index
    %c0_1 = arith.constant 0 : index
    %c0_2 = arith.constant 0 : index
    %c0_3 = arith.constant 0 : index
    %3 = vector.load %arg4[%c0, %c0_1, %c0_2, %c0_3] : memref<1x2x8x16xf32, #tpu.memory_space<vmem>>, vector<1x2x8x16xf32>
    %4 = vector.shape_cast %3 : vector<1x2x8x16xf32> to vector<2x8x16xf32>
    %c0_4 = arith.constant 0 : index
    %c0_5 = arith.constant 0 : index
    %c0_6 = arith.constant 0 : index
    %c0_7 = arith.constant 0 : index
    %5 = vector.load %arg5[%c0_4, %c0_5, %c0_6, %c0_7] : memref<1x2x8x16xf32, #tpu.memory_space<vmem>>, vector<1x2x8x16xf32>
    %6 = vector.shape_cast %5 : vector<1x2x8x16xf32> to vector<2x8x16xf32>
    %c0_8 = arith.constant 0 : index
    %c0_9 = arith.constant 0 : index
    %c0_10 = arith.constant 0 : index
    %c0_11 = arith.constant 0 : index
    %7 = vector.load %arg6[%c0_8, %c0_9, %c0_10, %c0_11] : memref<1x2x8x16xf32, #tpu.memory_space<vmem>>, vector<1x2x8x16xf32>
    %8 = vector.shape_cast %7 : vector<1x2x8x16xf32> to vector<2x8x16xf32>
    "tpu.trace_start"() <{level = 10 : i32, message = "hqd,hkd->hqk"}> : () -> ()
    %cst = arith.constant dense<0.000000e+00> : vector<2x8x8xf32>
    %9 = tpu.matmul %4, %6, %cst {dimension_numbers = #tpu.dot_dimension_numbers<[2], [2], [1], [1], [0, 0, 0, 1, 1, 1], [0], [0]>} : vector<2x8x16xf32>, vector<2x8x16xf32>, vector<2x8x8xf32> -> vector<2x8x8xf32>
    "tpu.trace_stop"() : () -> ()
    %c0_12 = arith.constant 0 : index
    %c0_13 = arith.constant 0 : index
    %c0_14 = arith.constant 0 : index
    %10 = vector.load %arg10[%c0_12, %c0_13, %c0_14] : memref<2x8x1xf32, #tpu.memory_space<vmem>>, vector<2x8x1xf32>
    %cst_15 = arith.constant dense<0xFF800000> : vector<2x8xf32>
    %11 = vector.multi_reduction <maximumf>, %9, %cst_15 [2] : vector<2x8x8xf32> to vector<2x8xf32>
    %12 = vector.shape_cast %11 : vector<2x8xf32> to vector<2x8x1xf32>
    %13 = arith.maximumf %10, %12 : vector<2x8x1xf32>
    %14 = arith.subf %10, %13 : vector<2x8x1xf32>
    %15 = math.exp %14 : vector<2x8x1xf32>
    %16 = vector.broadcast %13 : vector<2x8x1xf32> to vector<2x8x8xf32>
    %17 = arith.subf %9, %16 : vector<2x8x8xf32>
    %18 = math.exp %17 : vector<2x8x8xf32>
    %c0_16 = arith.constant 0 : index
    %c0_17 = arith.constant 0 : index
    %c0_18 = arith.constant 0 : index
    %19 = vector.load %arg11[%c0_16, %c0_17, %c0_18] : memref<2x8x1xf32, #tpu.memory_space<vmem>>, vector<2x8x1xf32>
    %20 = arith.mulf %15, %19 : vector<2x8x1xf32>
    %cst_19 = arith.constant dense<0.000000e+00> : vector<2x8xf32>
    %21 = vector.multi_reduction <add>, %18, %cst_19 [2] : vector<2x8x8xf32> to vector<2x8xf32>
    %22 = vector.shape_cast %21 : vector<2x8xf32> to vector<2x8x1xf32>
    %23 = arith.addf %20, %22 : vector<2x8x1xf32>
    %c0_20 = arith.constant 0 : index
    %c0_21 = arith.constant 0 : index
    %c0_22 = arith.constant 0 : index
    %24 = vector.load %arg11[%c0_20, %c0_21, %c0_22] : memref<2x8x1xf32, #tpu.memory_space<vmem>>, vector<2x8x1xf32>
    tpu.vector_store %arg11[%c0_20, %c0_21, %c0_22], %23 {strides = array<i32>} : memref<2x8x1xf32, #tpu.memory_space<vmem>>, vector<2x8x1xf32>,
    %c0_23 = arith.constant 0 : index
    %c0_24 = arith.constant 0 : index
    %c0_25 = arith.constant 0 : index
    %25 = vector.load %arg12[%c0_23, %c0_24, %c0_25] : memref<2x8x16xf32, #tpu.memory_space<vmem>>, vector<2x8x16xf32>
    %26 = vector.broadcast %15 : vector<2x8x1xf32> to vector<2x8x16xf32>
    %27 = arith.mulf %26, %25 : vector<2x8x16xf32>
    "tpu.trace_start"() <{level = 10 : i32, message = "hqk,hkd->hqd"}> : () -> ()
    %cst_26 = arith.constant dense<0.000000e+00> : vector<2x8x16xf32>
    %28 = tpu.matmul %18, %8, %cst_26 {dimension_numbers = #tpu.dot_dimension_numbers<[2], [1], [1], [2], [0, 0, 0, 1, 1, 2], [0], [0]>} : vector<2x8x8xf32>, vector<2x8x16xf32>, vector<2x8x16xf32> -> vector<2x8x16xf32>
    "tpu.trace_stop"() : () -> ()
    %29 = arith.addf %27, %28 : vector<2x8x16xf32>
    %c0_27 = arith.constant 0 : index
    %c0_28 = arith.constant 0 : index
    %c0_29 = arith.constant 0 : index
    %30 = vector.load %arg12[%c0_27, %c0_28, %c0_29] : memref<2x8x16xf32, #tpu.memory_space<vmem>>, vector<2x8x16xf32>
    tpu.vector_store %arg12[%c0_27, %c0_28, %c0_29], %29 {strides = array<i32>} : memref<2x8x16xf32, #tpu.memory_space<vmem>>, vector<2x8x16xf32>,
    %c0_30 = arith.constant 0 : index
    %c0_31 = arith.constant 0 : index
    %c0_32 = arith.constant 0 : index
    %31 = vector.load %arg10[%c0_30, %c0_31, %c0_32] : memref<2x8x1xf32, #tpu.memory_space<vmem>>, vector<2x8x1xf32>
    tpu.vector_store %arg10[%c0_30, %c0_31, %c0_32], %13 {strides = array<i32>} : memref<2x8x1xf32, #tpu.memory_space<vmem>>, vector<2x8x1xf32>,
    %c0_i32_33 = arith.constant 0 : i32
    %32 = arith.cmpi eq, %arg3, %c0_i32_33 : i32
    %33 = arith.extui %32 : i1 to i32
    %c0_i32_34 = arith.constant 0 : i32
    %34 = arith.cmpi ne, %33, %c0_i32_34 : i32
    scf.if %34 {
      %c0_35 = arith.constant 0 : index
      %c0_36 = arith.constant 0 : index
      %c0_37 = arith.constant 0 : index
      %35 = vector.load %arg12[%c0_35, %c0_36, %c0_37] : memref<2x8x16xf32, #tpu.memory_space<vmem>>, vector<2x8x16xf32>
      %c0_38 = arith.constant 0 : index
      %c0_39 = arith.constant 0 : index
      %c0_40 = arith.constant 0 : index
      %36 = vector.load %arg11[%c0_38, %c0_39, %c0_40] : memref<2x8x1xf32, #tpu.memory_space<vmem>>, vector<2x8x1xf32>
      %37 = vector.broadcast %36 : vector<2x8x1xf32> to vector<2x8x16xf32>
      %38 = arith.divf %35, %37 : vector<2x8x16xf32>
      %39 = vector.extract_strided_slice %38 {offsets = [0, 0, 0], sizes = [1, 8, 16], strides = [1, 1, 1]} : vector<2x8x16xf32> to vector<1x8x16xf32>
      %40 = vector.shape_cast %39 : vector<1x8x16xf32> to vector<8x16xf32>
      %c0_41 = arith.constant 0 : index
      %c0_42 = arith.constant 0 : index
      %c0_43 = arith.constant 0 : index
      %c0_44 = arith.constant 0 : index
      %41 = vector.load %arg7[%c0_41, %c0_42, %c0_43, %c0_44] : memref<1x2x16x32xf32, #tpu.memory_space<vmem>>, vector<1x1x16x32xf32>
      %42 = vector.shape_cast %41 : vector<1x1x16x32xf32> to vector<16x32xf32>
      %cst_45 = arith.constant dense<0.000000e+00> : vector<8x32xf32>
      %43 = tpu.matmul %40, %42, %cst_45 {dimension_numbers = #tpu.dot_dimension_numbers<[1], [0], [0], [1], [0, 0, 1, 1], [], []>} : vector<8x16xf32>, vector<16x32xf32>, vector<8x32xf32> -> vector<8x32xf32>
      %44 = vector.extract_strided_slice %38 {offsets = [1, 0, 0], sizes = [1, 8, 16], strides = [1, 1, 1]} : vector<2x8x16xf32> to vector<1x8x16xf32>
      %45 = vector.shape_cast %44 : vector<1x8x16xf32> to vector<8x16xf32>
      %c0_46 = arith.constant 0 : index
      %c1 = arith.constant 1 : index
      %c0_47 = arith.constant 0 : index
      %c0_48 = arith.constant 0 : index
      %46 = vector.load %arg7[%c0_46, %c1, %c0_47, %c0_48] : memref<1x2x16x32xf32, #tpu.memory_space<vmem>>, vector<1x1x16x32xf32>
      %47 = vector.shape_cast %46 : vector<1x1x16x32xf32> to vector<16x32xf32>
      %cst_49 = arith.constant dense<0.000000e+00> : vector<8x32xf32>
      %48 = tpu.matmul %45, %47, %cst_49 {dimension_numbers = #tpu.dot_dimension_numbers<[1], [0], [0], [1], [0, 0, 1, 1], [], []>} : vector<8x16xf32>, vector<16x32xf32>, vector<8x32xf32> -> vector<8x32xf32>
      %49 = arith.addf %43, %48 : vector<8x32xf32>
      %c0_i32_50 = arith.constant 0 : i32
      %50 = arith.cmpi eq, %arg2, %c0_i32_50 : i32
      %51 = arith.extui %50 : i1 to i32
      %c0_i32_51 = arith.constant 0 : i32
      %52 = arith.cmpi ne, %51, %c0_i32_51 : i32
      scf.if %52 {
        %c0_56 = arith.constant 0 : index
        %c0_57 = arith.constant 0 : index
        %59 = vector.load %arg8[%c0_56, %c0_57] : memref<1x32xf32, #tpu.memory_space<vmem>>, vector<1x32xf32>
        %60 = vector.broadcast %59 : vector<1x32xf32> to vector<8x32xf32>
        %61 = arith.addf %49, %60 : vector<8x32xf32>
        %c0_58 = arith.constant 0 : index
        %c0_59 = arith.constant 0 : index
        %62 = vector.load %arg13[%c0_58, %c0_59] : memref<8x32xf32, #tpu.memory_space<vmem>>, vector<8x32xf32>
        tpu.vector_store %arg13[%c0_58, %c0_59], %61 {strides = array<i32>} : memref<8x32xf32, #tpu.memory_space<vmem>>, vector<8x32xf32>,
      } else {
      }
      %c0_i32_52 = arith.constant 0 : i32
      %53 = arith.cmpi sgt, %arg2, %c0_i32_52 : i32
      %54 = arith.extui %53 : i1 to i32
      %c0_i32_53 = arith.constant 0 : i32
      %55 = arith.cmpi ne, %54, %c0_i32_53 : i32
      scf.if %55 {
        %c0_56 = arith.constant 0 : index
        %c0_57 = arith.constant 0 : index
        %59 = vector.load %arg13[%c0_56, %c0_57] : memref<8x32xf32, #tpu.memory_space<vmem>>, vector<8x32xf32>
        %60 = arith.addf %59, %49 : vector<8x32xf32>
        %c0_58 = arith.constant 0 : index
        %c0_59 = arith.constant 0 : index
        %61 = vector.load %arg13[%c0_58, %c0_59] : memref<8x32xf32, #tpu.memory_space<vmem>>, vector<8x32xf32>
        tpu.vector_store %arg13[%c0_58, %c0_59], %60 {strides = array<i32>} : memref<8x32xf32, #tpu.memory_space<vmem>>, vector<8x32xf32>,
      } else {
      }
      %c0_i32_54 = arith.constant 0 : i32
      %56 = arith.cmpi eq, %arg2, %c0_i32_54 : i32
      %57 = arith.extui %56 : i1 to i32
      %c0_i32_55 = arith.constant 0 : i32
      %58 = arith.cmpi ne, %57, %c0_i32_55 : i32
      scf.if %58 {
        %c0_56 = arith.constant 0 : index
        %c0_57 = arith.constant 0 : index
        %59 = vector.load %arg13[%c0_56, %c0_57] : memref<8x32xf32, #tpu.memory_space<vmem>>, vector<8x32xf32>
        %c0_58 = arith.constant 0 : index
        %c0_59 = arith.constant 0 : index
        %c0_60 = arith.constant 0 : index
        %60 = vector.load %arg9[%c0_58, %c0_59, %c0_60] : memref<1x8x32xf32, #tpu.memory_space<vmem>>, vector<1x8x32xf32>
        %61 = vector.shape_cast %60 : vector<1x8x32xf32> to vector<8x32xf32>
        %62 = vector.shape_cast %59 : vector<8x32xf32> to vector<1x8x32xf32>
        tpu.vector_store %arg9[%c0_58, %c0_59, %c0_60], %62 {strides = array<i32>} : memref<1x8x32xf32, #tpu.memory_space<vmem>>, vector<1x8x32xf32>,
      } else {
      }
    } else {
    }
    return
  }
  func.func @transform_0(%arg0: i32, %arg1: i32, %arg2: i32, %arg3: i32) -> (i32, i32, i32, i32) {
    %c0_i32 = arith.constant 0 : i32
    %c0_i32_0 = arith.constant 0 : i32
    return %arg0, %arg2, %arg1, %c0_i32 : i32, i32, i32, i32
  }
  func.func @transform_1(%arg0: i32, %arg1: i32, %arg2: i32, %arg3: i32) -> (i32, i32, i32, i32) {
    %c0_i32 = arith.constant 0 : i32
    %c0_i32_0 = arith.constant 0 : i32
    return %arg0, %arg2, %arg3, %c0_i32 : i32, i32, i32, i32
  }
  func.func @transform_2(%arg0: i32, %arg1: i32, %arg2: i32, %arg3: i32) -> (i32, i32, i32, i32) {
    %c0_i32 = arith.constant 0 : i32
    %c0_i32_0 = arith.constant 0 : i32
    return %arg0, %arg2, %arg3, %c0_i32 : i32, i32, i32, i32
  }
  func.func @transform_3(%arg0: i32, %arg1: i32, %arg2: i32, %arg3: i32) -> (i32, i32, i32, i32) {
    %c0_i32 = arith.constant 0 : i32
    %c0_i32_0 = arith.constant 0 : i32
    %c0_i32_1 = arith.constant 0 : i32
    %c0_i32_2 = arith.constant 0 : i32
    return %arg2, %c0_i32, %c0_i32_0, %c0_i32_1 : i32, i32, i32, i32
  }
  func.func @transform_4(%arg0: i32, %arg1: i32, %arg2: i32, %arg3: i32) -> (i32, i32) {
    %c0_i32 = arith.constant 0 : i32
    %c0_i32_0 = arith.constant 0 : i32
    %c0_i32_1 = arith.constant 0 : i32
    return %c0_i32, %c0_i32_0 : i32, i32
  }
  func.func @transform_5(%arg0: i32, %arg1: i32, %arg2: i32, %arg3: i32) -> (i32, i32, i32) {
    %c0_i32 = arith.constant 0 : i32
    %c0_i32_0 = arith.constant 0 : i32
    return %arg0, %arg1, %c0_i32 : i32, i32, i32
  }
}

</mosaic_0001>

<bundles_post_ra>
// kernel: attention_pallas.2
= control target key start
LH: loop header
LB: loop body
LE: loop exit
PB: predicated region body
PF: predicated region fallthrough
CT: control target
= control target key end

     0   :  { %s785_s15 = smov 0   ;;  %s787_s16 = smov 0   ;;  %s845_s0 = inlined_call_operand.vmem [shape: f32[2,8,32], index: 0, kind: input, shape index: {}]   ;;  %s846_s1 = inlined_call_operand.vmem [shape: f32[2,32,48], index: 1, kind: input, shape index: {}]   ;;  %s847_s2 = inlined_call_operand.vmem [shape: f32[2,2,8,16], index: 2, kind: output, shape index: {0}]   ;;  %s848_s3 = inlined_call_operand.vmem [shape: f32[2,2,8,16], index: 3, kind: output, shape index: {1}]   ;;  %s849_s4 = inlined_call_operand.vmem [shape: f32[2,2,8,16], index: 4, kind: output, shape index: {2}]  }
   0x1   :  { %s789_s17 = smov 0   ;;  %s791_s18 = smov 0  }
   0x2   :  { %s793_s19 = smov 0  }
   0x3 LB: > { %s27_s20 = sadd.s32 1, %s745_s17  ;;  %s34_s21 = sadd.s32 1, %s749_s18  ;;  %s753_s19 = sphi %s793_s19, %s15_s19   ;;  %s749_s18 = sphi %s791_s18, %s853_s18   ;;  %s745_s17 = sphi %s789_s17, %s852_s17   ;;  %s741_s16 = sphi %s787_s16, %s851_s16   ;;  %s737_s15 = sphi %s785_s15, %s850_s15  }
   0x4   : > { %p28_p0 = scmp.ge.s32.totalorder %s27_s20, 2  ;;  %p634_p1 = scmp.ge.s32.totalorder %s753_s19, 1 }
   0x5   : > { %p212_p2 = scmp.lt.s32.totalorder %s753_s19, 5 }
   0x6   : > { %s855_s20 = smov (%p28_p0, %s27_s20), 0  ;;  %s857_s21 = smov (!%p28_p0, %s34_s21), %s749_s18 }
   0x7   : > { %p213_p3 = pnand %p634_p1, %p212_p2  ;;  %p36_p4 = scmp.ge.s32.totalorder %s857_s21, 2 }
   0x8   : > { %p280_p5 = scmp.lt.s32.totalorder (!%p213_p3), %s737_s15, 1  ;;  %p273_p6 = scmp.lt.s32.totalorder (!%p213_p3), %s741_s16, 1  ;;  %v755_v0 = vmov (!%p213_p3), 0.0|0.0   ;;  %vm756_vm0 = vmmov (!%p213_p3), 0   ;;  %v757_v1 = vmov (!%p213_p3), 0.0   ;;  %vm323_vm1 = vcmask (!%p213_p3), 261120  }
   0x9   : > { %s859_s21 = smov (%p36_p4, %s857_s21), 0  ;;  %216 = sbr.rel (%p213_p3) target bundleno = 361 (0x169), region = 28 }
   0xa   : > { %664 = vmatprep.subr.bf16.mxu0 (!%p213_p3), %v755_v0  ;;  %661 = vmatprep.mubr.msk.f32.mxu0 (!%p213_p3), %vm756_vm0, %v757_v1  ;;  %vm397_vm2 = vcmask (!%p213_p3), 130048   ;;  %s758_s10 = smov (!%p213_p3), 112   ;;  %s759_s11 = smov (!%p213_p3), 96  }
  0x10   : > { %s861_s15 = smov (!%p280_p5, %s737_s15), 1  ;;  %s863_s16 = smov (!%p273_p6, %s741_s16), 1 }
  0x11   : > { %s647_s22 = sshll.u32 %s861_s15, 5  ;;  %s638_s26 = sshll.u32 %s863_s16, 1 }
  0x12   : > { %s284_s25 = scalar_lea.vmem %s846_s1, %s647_s22  ;;  %s635_s27 = sshll.u32 %s863_s16, 3 }
  0x13   : > { %v319_v2 = vld [vmem:[%s284_s25] sm:$0xff]  ;;  %v320_v3 = vld [vmem:[%s284_s25 + $0x8] sm:$0xff]  ;;  %v321_v4 = vld [vmem:[%s284_s25 + $0x10] sm:$0xff]  ;;  %s293_s28 = sadd.s32 %s638_s26, %s861_s15  ;;  %s279_s5 = scalar_lea.vmem %s845_s0, %s635_s27 }
  0x14   : > { %v665_v5 = vpack.c.bf16 %v320_v3, %v319_v2  ;;  %v322_v6 = vld [vmem:[%s284_s25 + $0x18] sm:$0xff]  ;;  %v318_v8 = vld [vmem:[%s279_s5] sm:$0xff]  ;;  %s639_s6 = sshll.u32 %s293_s28, 3 }
  0x15   : > { %v668_v7 = vpack.c.bf16 %v322_v6, %v321_v4  ;;  %s295_s9 = scalar_lea.vmem %s847_s2, %s639_s6  ;;  %s306_s14 = scalar_lea.vmem %s848_s3, %s639_s6 }
  0x16   : > { %666 = vmatpush3.bf16.msra.mxu0 %v665_v5  ;;  %s317_s22 = scalar_lea.vmem %s849_s4, %s639_s6 }
  0x17   : > { %667 = vmatprep.subr.bf16.mxu0 %v755_v0 }
  0x1a   : > { %669 = vmatpush3.bf16.msra.mxu0 %v668_v7 }
  0x1d   : > { %662 = vmatmul.mubr.msk.f32.vlgmr.msra.gmra.mrb[0].mxu0 %vm323_vm1, %v318_v8 }
  0xf0   : > { %v393_v9 = vpop.f32.mrb[0].mxu0 }
  0xf1   : > { %398 = vst.msk [vmem:[%s295_s9] sm:$0xff] %vm397_vm2, %v393_v9  ;;  %400 = vrot.lane.b32.xlu0 %v393_v9, %s758_s10  ;;  %v663_v10 = vpop.f32.mrb[1].mxu0 }
  0xf5   : > { %404 = vrot.lane.b32.xlu0 %v393_v9, %s759_s11 }
 0x163   : > { %v401_v11 = vpop.permute.xlu0 %400 }
 0x164   : > { %403 = vst.msk [vmem:[%s306_s14] sm:$0xff] %vm397_vm2, %v401_v11 }
 0x167   : > { %v405_v12 = vpop.permute.xlu0 %404 }
 0x168   : > { %407 = vst.msk [vmem:[%s317_s22] sm:$0xff] %vm397_vm2, %v405_v12 }
 0x169 PF: > { %s15_s19 = sadd.s32 1, %s753_s19   ;;  %s850_s15 = smov %s745_s17 }
 0x16a   : > { %p12_p7 = scmp.ge.s32.totalorder %s15_s19, 6   ;;  %s851_s16 = smov %s749_s18 }
 0x16b   : > { %s852_s17 = smov %s855_s20  ;;  %s853_s18 = smov %s859_s21 }
 0x16c   :  { %14 = sbr.rel (!%p12_p7) target bundleno = 3 (0x3), region = 85 }

// kernel: attention_pallas.3
= control target key start
LH: loop header
LB: loop body
LE: loop exit
PB: predicated region body
PF: predicated region fallthrough
CT: control target
= control target key end

     0   :  { %10 = vsyncpa [#allocation7], 0  ;;  %s1589_s0 = inlined_call_operand.vmem [shape: f32[2,2,8,16], index: 0, kind: input, shape index: {}]   ;;  %s1590_s1 = inlined_call_operand.vmem [shape: f32[2,2,8,16], index: 1, kind: input, shape index: {}]   ;;  %s1591_s2 = inlined_call_operand.vmem [shape: f32[2,2,8,16], index: 2, kind: input, shape index: {}]   ;;  %s1592_s3 = inlined_call_operand.vmem [shape: f32[1,2,16,32], index: 3, kind: input, shape index: {}]   ;;  %s1593_s4 = inlined_call_operand.vmem [shape: f32[1,32], index: 4, kind: input, shape index: {}]   ;;  %s1594_s5 = inlined_call_operand.hbm [shape: f32[2,8,32], index: 5, kind: output, shape index: {}]  }
   0x1   :  { %12 = vsyncpa [#allocation7 + $0x1], 0  ;;  %s1407_s18 = smov 0   ;;  %s1409_s19 = smov 0  }
   0x2   :  { %s1411_s20 = smov 0   ;;  %s1413_s21 = smov 0  }
   0x3   :  { %s1415_s22 = smov 0   ;;  %s1417_s23 = smov 0  }
   0x4 LB: > { %s1132_s24 = sadd.s32 4294967295, %s1369_s23   ;;  %s1133_s25 = sadd.s32 4294967294, %s1369_s23   ;;  %s1369_s23 = sphi %s1417_s23, %s18_s23   ;;  %s1365_s22 = sphi %s1415_s22, %s1601_s22   ;;  %s1361_s21 = sphi %s1413_s21, %s1600_s21   ;;  %s1357_s20 = sphi %s1411_s20, %s1599_s20   ;;  %s1353_s19 = sphi %s1409_s19, %s1598_s19   ;;  %s1349_s18 = sphi %s1407_s18, %s1597_s18  }
   0x5   : > { %s44_s26 = sadd.s32 1, %s1365_s22  ;;  %s190_s27 = sadd.s32 1, %s1357_s20 }
   0x6   : > { %p46_p0 = scmp.ge.s32.totalorder %s44_s26, 2  ;;  %p200_p1 = scmp.ne.s32.totalorder %s1357_s20, %s1353_s19 }
   0x7   : > { %p201_p2 = scmp.eq.s32.totalorder %s1132_s24, 1  ;;  %p206_p3 = scmp.ne.s32.totalorder %s1353_s19, %s1349_s18 }
   0x8   : > { %s1603_s26 = smov (%p46_p0, %s44_s26), 0  ;;  %p207_p5 = scmp.eq.s32.totalorder %s1133_s25, 1 }
   0x9   : > { %p1447_p4 = por %p201_p2, %p200_p1  ;;  %s185_s29 = ssub.s32 %s1365_s22, %s1603_s26 }
   0xa   : > { %p1137_p6 = scmp.ge.s32.totalorder %s1369_s23, 1  ;;  %p188_p7 = scmp.eq.s32.totalorder %s185_s29, 0 }
   0xb   : > { %p1454_p8 = por %p207_p5, %p206_p3  ;;  %p284_p9 = scmp.lt.s32.totalorder %s1369_s23, 3 }
   0xc   : > { %s1460_s6 = scalar_select %p188_p7, %s1357_s20, %s190_s27  }
   0xd   : > { %p285_p10 = pnand %p1137_p6, %p284_p9 }
   0xe   : > { %p349_p11 = scmp.lt.s32.totalorder (!%p285_p10), %s1361_s21, 1  ;;  %vm401_vm0 = vcmask (!%p285_p10), 130048   ;;  %v1371_v0 = vmov (!%p285_p10), 0.0   ;;  %vm1372_vm1 = vmmov (!%p285_p10), 0   ;;  %vm396_vm2 = vcmask (!%p285_p10), 7168   ;;  %v798_v47 = vld [vmem:[%s1592_s3] sm:$0xff] (!%p285_p10) }
   0xf   : > { %288 = sbr.rel (%p285_p10) target bundleno = 1066 (0x42a), region = 40  ;;  %1177 = vmatprep.subr.mxu0 (!%p285_p10), %v1371_v0  ;;  %402 = vst.msk [vmem:[#allocation4] sm:$0xff] (!%p285_p10), %vm401_vm0, %v1371_v0  ;;  %403 = vst.msk [vmem:[#allocation4 + $0x8] sm:$0xff] (!%p285_p10), %vm401_vm0, %v1371_v0  ;;  %1179 = vmatprep.mubr.msk.f32.mxu0 (!%p285_p10), %vm1372_vm1, %v1371_v0  ;;  %v1373_v5 = vmov (!%p285_p10), -inf   ;;  %vm565_vm3 = vcmask (!%p285_p10), 64512   ;;  %v1374_v12 = vmov (!%p285_p10), 0  }
  0x10   : > { %1182 = vmatprep.subr.mxu1 (!%p285_p10), %v1371_v0  ;;  %1184 = vmatprep.mubr.msk.f32.mxu1 (!%p285_p10), %vm1372_vm1, %v1371_v0  ;;  %397 = vst.msk [vmem:[#allocation2] sm:$0xff] (!%p285_p10), %vm396_vm2, %v1373_v5  ;;  %398 = vst.msk [vmem:[#allocation2 + $0x8] sm:$0xff] (!%p285_p10), %vm396_vm2, %v1373_v5  ;;  %v799_v48 = vld [vmem:[%s1592_s3 + $0x8] sm:$0xff] (!%p285_p10)  ;;  %v1375_v50 = vmov (!%p285_p10), 0.0|0.0   ;;  %v1151_v51 = vld [vmem:[%s1592_s3 + $0x10] sm:$0xff] (!%p285_p10)  ;;  %vm961_vm4 = vcmask (!%p285_p10), 261120  }
  0x11   : > { %399 = vst.msk [vmem:[#allocation3] sm:$0xff] (!%p285_p10), %vm396_vm2, %v1371_v0  ;;  %400 = vst.msk [vmem:[#allocation3 + $0x8] sm:$0xff] (!%p285_p10), %vm396_vm2, %v1371_v0  ;;  %1277 = vset.pattern.permute.xlu1 (!%p285_p10), %v1374_v12  ;;  %1278 = vset.pattern.permute.xlu0 (!%p285_p10), %v1374_v12  ;;  %v1215_v49 = vpack.c.bf16 (!%p285_p10), %v799_v48, %v798_v47  ;;  %v1152_v52 = vld [vmem:[%s1592_s3 + $0x18] sm:$0xff] (!%p285_p10)  ;;  %s1157_s15 = sshll.u32 (!%p285_p10), %s1361_s21, 7 }
  0x12   : > { %v1212_v53 = vpack.c.bf16 (!%p285_p10), %v1152_v52, %v1151_v51  ;;  %s1542_s27 = scalar_lea.hbm (!%p285_p10), %s1594_s5, %s1157_s15 }
  0x16   : > { %s350_s7 = scalar_select %p349_p11, %s1361_s21, 1  ;;  %v611_v54 = vld [vmem:[#allocation4] sm:$0xff]  ;;  %v612_v57 = vld [vmem:[#allocation4 + $0x8] sm:$0xff] }
  0x17   : > { %v563_v13 = vld [vmem:[#allocation2] sm:$0xff]  ;;  %v564_v16 = vld [vmem:[#allocation2 + $0x8] sm:$0xff]  ;;  %s1376_s21 = smov [#allocation6]  }
  0x18   : > { %s1474_s8 = sshll.u32 %s350_s7, 4  ;;  %v596_v37 = vld [vmem:[#allocation3] sm:$0xff]  ;;  %v597_v40 = vld [vmem:[#allocation3 + $0x8] sm:$0xff] }
  0x19   : > { %s372_s11 = scalar_lea.vmem %s1590_s1, %s1474_s8  ;;  %s359_s14 = scalar_lea.vmem %s1589_s0, %s1474_s8 }
  0x1a   : > { %v406_v1 = vld [vmem:[%s372_s11] sm:$0xff]  ;;  %v407_v2 = vld [vmem:[%s372_s11 + $0x8] sm:$0xff]  ;;  %s385_s17 = scalar_lea.vmem %s1591_s2, %s1474_s8  ;;  %s345_s11 = sand.u32 1, %s1353_s19  }
  0x1b   : > { %1178 = vmatpush3.xpose.msk.msra.mxu0 %vm401_vm0, %v406_v1  ;;  %v404_v3 = vld [vmem:[%s359_s14] sm:$0xff]  ;;  %1183 = vmatpush3.xpose.msk.msra.mxu1 %vm401_vm0, %v407_v2  ;;  %v405_v4 = vld [vmem:[%s359_s14 + $0x8] sm:$0xff]  ;;  %s1138_s14 = sshll.u32 %s345_s11, 3  ;;  %s978_s29 = scalar_lea.sflag [#allocation7], %s345_s11 }
  0x1c   : > { %1187 = vmatprep.subr.mxu0 %v1371_v0  ;;  %1192 = vmatprep.subr.mxu1 %v1371_v0  ;;  %v408_v21 = vld [vmem:[%s385_s17] sm:$0xff]  ;;  %v409_v22 = vld [vmem:[%s385_s17 + $0x8] sm:$0xff]  ;;  %s347_s16 = scalar_lea.vmem [#allocation6], %s1138_s14  ;;  %s1295_s8 = sshll.u32 %s1376_s21, 4  ;;  %s1296_s8 = int_to_ptr.vmem [resolvable:$false] %s1295_s8 }
  0x1d   : > { %s992_s17 = sshll.u32 %s347_s16, 4  ;;  %s1297_s9 = scalar_lea.vmem %s1296_s8, 256  ;;  %s1544_s17 = int_to_ptr.vmem [resolvable:$true] %s992_s17 }
  0x1e   : > { %1180 = vmatmul.mubr.msk.f32.vlgmr.msra.gmra.mrb[0].mxu0 %vm401_vm0, %v404_v3  ;;  %1185 = vmatmul.mubr.msk.f32.vlgmr.msra.gmra.mrb[0].mxu1 %vm401_vm0, %v405_v4  ;;  %s1291_s7 = scalar_lea.vmem %s1544_s17, 128  ;;  %p1298_p1 = scmp.lt.s32.totalorder %s1544_s17, %s1296_s8 }
  0x1f   : > { %1189 = vmatprep.mubr.msk.f32.mxu0 %vm1372_vm1, %v1371_v0  ;;  %1194 = vmatprep.mubr.msk.f32.mxu1 %vm1372_vm1, %v1371_v0  ;;  %p1292_p12 = scmp.ne.s32.totalorder %s1544_s17, %s1291_s7  ;;  %p1299_p2 = scmp.lt.s32.totalorder %s1297_s9, %s1291_s7 }
  0x20   : > { %1188 = vmatpush3.msra.mxu0 %v408_v21  ;;  %1193 = vmatpush3.msra.mxu1 %v409_v22 }
  0x21   : > { %1214 = vmatprep.subr.bf16.mxu1 %v1375_v50  ;;  %1211 = vmatprep.subr.bf16.mxu0 %v1375_v50  ;;  %p1293_p13 = pnand %p1292_p12, %p1447_p4  ;;  %p1300_p3 = por %p1299_p2, %p1298_p1 }
  0x23   : > { %p1294_p0 = pneg %p1293_p13 }
  0x25   : > { %p1301_p5 = pnand %p1300_p3, %p1294_p0 }
  0xf1   : > { %v483_v6 = vpop.f32.mrb[0].mxu0  ;;  %v559_v7 = vpop.f32.mrb[0].mxu1 }
  0xf2   : > { %v1181_v8 = vpop.f32.mrb[1].mxu0  ;;  %v566_v9 = vsel %vm565_vm3, %v483_v6, -inf  ;;  %v1186_v10 = vpop.f32.mrb[1].mxu1  ;;  %v569_v11 = vsel %vm565_vm3, %v559_v7, -inf }
  0xf3   : > { %567 = vmax.xlane.f32.xlu0 %v566_v9 }
  0xf7   : > { %570 = vmax.xlane.f32.xlu0 %v569_v11 }
 0x180   : > { %v568_v14 = vpop.xlane.xlu0 %567 }
 0x181   : > { %v572_v15 = vmax.f32 %v563_v13, %v568_v14 }
 0x183   : > { %v574_v17 = vsub.f32 %v563_v13, %v572_v15  ;;  %775 = vst.msk [vmem:[#allocation2] sm:$0xff] %vm396_vm2, %v572_v15  ;;  %582 = vperm.xlu1 %1277, %v572_v15   ;;  %v1155_v13 = vld [vmem:[%s1593_s4] ss:$0 sm:$0xff] }
 0x184   : > { %v571_v18 = vpop.xlane.xlu0 %570 }
 0x185   : > { %v573_v19 = vmax.f32 %v564_v16, %v571_v18  ;;  %v576_v34 = vmul.f32 1.442695, %v574_v17 }
 0x187   : > { %v575_v20 = vsub.f32 %v564_v16, %v573_v19  ;;  %776 = vst.msk [vmem:[#allocation2 + $0x8] sm:$0xff] %vm396_vm2, %v573_v19  ;;  %587 = vperm.xlu1 %1277, %v573_v19  }
 0x189   : > { %v578_v33 = vmul.f32 1.442695, %v575_v20 }
 0x202   : > { %v583_v23 = vpop.permute.xlu1 %582 }
 0x203   : > { %v590_v24 = vsub.f32 %v483_v6, %v583_v23 }
 0x205   : > { %v592_v25 = vmul.f32 1.442695, %v590_v24 }
 0x206   : > { %v588_v26 = vpop.permute.xlu1 %587 }
 0x207   : > { %1279 = vpow2.f32 %v592_v25  ;;  %v591_v27 = vsub.f32 %v559_v7, %v588_v26 }
 0x209   : > { %v594_v28 = vmul.f32 1.442695, %v591_v27 }
 0x20b   : > { %1281 = vpow2.f32 %v594_v28 }
 0x20c   : > { %1283 = vpow2.f32 %v578_v33 }
 0x20d   : > { %1285 = vpow2.f32 %v576_v34 }
 0x211   : > { %v1280_v29 = vpop.eup %1279 }
 0x212   : > { %1190 = vmatmul.mubr.msk.f32.vlgmr.msra.gmra.mrb[2].mxu0 %vm565_vm3, %v1280_v29  ;;  %v600_v30 = vsel %vm565_vm3, %v1280_v29, 0.0 }
 0x213   : > { %601 = vadd.xlane.f32.xlu0 %v600_v30  ;;  %1201 = vmatprep.mubr.msk.f32.mxu0 %vm1372_vm1, %v1371_v0 }
 0x214   : > { %1213 = vmatpush3.bf16.msra.mxu0 %v1212_v53 }
 0x215   : > { %v1282_v31 = vpop.eup %1281 }
 0x216   : > { %1195 = vmatmul.mubr.msk.f32.vlgmr.msra.gmra.mrb[2].mxu1 %vm565_vm3, %v1282_v31  ;;  %v603_v32 = vsel %vm565_vm3, %v1282_v31, 0.0  ;;  %v1284_v35 = vpop.eup %1283 }
 0x217   : > { %604 = vadd.xlane.f32.xlu1 %v603_v32  ;;  %1208 = vmatprep.mubr.msk.f32.mxu1 %vm1372_vm1, %v1371_v0  ;;  %v1286_v36 = vpop.eup %1285  ;;  %v599_v42 = vmul.f32 %v1284_v35, %v597_v40 }
 0x218   : > { %v598_v38 = vmul.f32 %v1286_v36, %v596_v37  ;;  %1216 = vmatpush3.bf16.msra.mxu1 %v1215_v49 }
 0x228   : > { %620 = vperm.xlu1 %1277, %v1284_v35  }
 0x229   : > { %615 = vperm.xlu0 %1278, %v1286_v36  }
 0x2a0   : > { %v602_v39 = vpop.xlane.xlu0 %601 }
 0x2a1   : > { %v606_v41 = vadd.f32 %v602_v39, %v598_v38 }
 0x2a3   : > { %609 = vst.msk [vmem:[#allocation3] sm:$0xff] %vm396_vm2, %v606_v41 }
 0x2a4   : > { %v605_v43 = vpop.xlane.xlu1 %604 }
 0x2a5   : > { %v607_v44 = vadd.f32 %v605_v43, %v599_v42 }
 0x2a7   : > { %610 = vst.msk [vmem:[#allocation3 + $0x8] sm:$0xff] %vm396_vm2, %v607_v44 }
 0x2a8   : > { %v616_v55 = vpop.permute.xlu0 %615  ;;  %v621_v58 = vpop.permute.xlu1 %620 }
 0x2a9   : > { %v623_v56 = vmul.f32 %v616_v55, %v611_v54  ;;  %v624_v62 = vmul.f32 %v621_v58, %v612_v57 }
 0x2aa   : > { %v782_v45 = vld [vmem:[#allocation3] sm:$0xff] }
 0x2ab   : > { %786 = vperm.xlu0 %1278, %v782_v45  }
 0x2ae   : > { %v783_v46 = vld [vmem:[#allocation3 + $0x8] sm:$0xff] }
 0x2af   : > { %791 = vperm.xlu0 %1278, %v783_v46  }
 0x2e5   : > { %v694_v59 = vpop.f32.mrb[2].mxu0 }
 0x2e6   : > { %v771_v60 = vadd.f32 %v694_v59, %v623_v56  ;;  %v1191_v61 = vpop.f32.mrb[3].mxu0 }
 0x2e8   : > { %773 = vst.msk [vmem:[#allocation4] sm:$0xff] %vm401_vm0, %v771_v60 }
 0x2e9   : > { %v767_v63 = vpop.f32.mrb[2].mxu1 }
 0x2ea   : > { %v772_v0 = vadd.f32 %v767_v63, %v624_v62  ;;  %v1196_v1 = vpop.f32.mrb[3].mxu1 }
 0x2ec   : > { %774 = vst.msk [vmem:[#allocation4 + $0x8] sm:$0xff] %vm401_vm0, %v772_v0 }
 0x2ef   : > { %v780_v5 = vld [vmem:[#allocation4] sm:$0xff] }
 0x2f3   : > { %v781_v8 = vld [vmem:[#allocation4 + $0x8] sm:$0xff] }
 0x32a   : > { %v787_v2 = vpop.permute.xlu0 %786 }
 0x32b   : > { %1287 = vrcp.f32 %v787_v2 }
 0x32e   : > { %v792_v3 = vpop.permute.xlu0 %791 }
 0x32f   : > { %1289 = vrcp.f32 %v792_v3 }
 0x335   : > { %v1288_v4 = vpop.eup %1287 }
 0x336   : > { %v795_v6 = vmul.f32 %v1288_v4, %v780_v5 }
 0x338   : > { %1209 = vmatmul.mubr.msk.f32.vlgmr.msra.gmra.mrb[4].mxu1 %vm401_vm0, %v795_v6 }
 0x339   : > { %v1290_v7 = vpop.eup %1289 }
 0x33a   : > { %v797_v9 = vmul.f32 %v1290_v7, %v781_v8 }
 0x33c   : > { %1202 = vmatmul.mubr.msk.f32.vlgmr.msra.gmra.mrb[4].mxu0 %vm401_vm0, %v797_v9 }
 0x40b   : > { %v945_v10 = vpop.f32.mrb[4].mxu1 }
 0x40c   : > { %v1210_v11 = vpop.f32.mrb[5].mxu1 }
 0x40f   : > { %v872_v12 = vpop.f32.mrb[4].mxu0 }
 0x410   : > { %v946_v14 = vadd.f32 %v945_v10, %v872_v12  ;;  %v1203_v15 = vpop.f32.mrb[5].mxu0 }
 0x412   : > { %v960_v16 = vadd.f32 %v1155_v13, %v946_v14 }
 0x414   : > { %962 = vst.msk [vmem:[#allocation5] sm:$0xff] %vm961_vm4, %v960_v16 }
 0x41b   : > { %v974_v17 = vld [vmem:[#allocation5] sm:$0xff] }
 0x41c   : > { %976 = vst.msk [vmem:[%s347_s16] sm:$0xff] %vm961_vm4, %v974_v17 }
 0x41d   : > { %1304 = shalt.err (!%p1301_p5)
}
 0x41e   : > { %s1305_s10 = scalar_lea.hbm %s1542_s27, 128  ;;  %s1309_s13 = scalar_lea.hbm %s1594_s5, 256 }
 0x41f   : > { %p1306_p6 = scmp.ne.s32.totalorder %s1542_s27, %s1305_s10  ;;  %p1310_p10 = scmp.lt.u32.totalorder %s1542_s27, %s1594_s5 }
 0x420   : > { %p1311_p11 = scmp.lt.u32.totalorder %s1309_s13, %s1305_s10  ;;  %p1313_p13 = scmp.lt.u32.totalorder %s1305_s10, %s1542_s27 }
 0x421   : > { %p1307_p7 = pnand %p1306_p6, %p1447_p4 }
 0x422   : > { %p1312_p12 = por %p1311_p11, %p1310_p10 }
 0x423   : > { %p1308_p9 = pneg %p1307_p7 }
 0x424   : > { %p1314_p0 = por %p1313_p13, %p1312_p12 }
 0x426   : > { %p1315_p1 = pnand %p1314_p0, %p1308_p9 }
 0x428   : > { %1318 = shalt.err (!%p1315_p1)
}
 0x429   : > { %1217 = dma.vmem_to_hbm [thread:$0]  (%p1447_p4), %s1544_s17, 128, %s1542_s27, %s978_s29  }
 0x42a PF: > { %p1223_p2 = scmp.ge.s32.totalorder %s1369_s23, 2  ;;  %s1004_s16 = sand.u32 1, %s1349_s18  }
 0x42b   : > { %s1005_s24 = scalar_lea.sflag [#allocation7], %s1004_s16 }
 0x42c   : > { %p1220_p3 = pnand %p1223_p2, %p1454_p8 }
 0x42e   : > { %1344 = dma.done.wait (!%p1220_p3), %s1005_s24, 128  }
 0x42f   : > { %1346 = vsyncadd (!%p1220_p3), %s1005_s24, 4294967168  ;;  %s18_s23 = sadd.s32 1, %s1369_s23   ;;  %s1597_s18 = smov %s1353_s19 }
 0x430   : > { %p15_p5 = scmp.ge.s32.totalorder %s18_s23, 4   ;;  %s1598_s19 = smov %s1357_s20 }
 0x431   : > { %s1599_s20 = smov %s1460_s6  ;;  %s1600_s21 = smov %s1365_s22 }
 0x432   : > { %s1601_s22 = smov %s1603_s26  ;;  %17 = sbr.rel (!%p15_p5) target bundleno = 4 (0x4), region = 105 }
 0x439   :  { %1010 = vsyncpa [#allocation7], 1 }
 0x43a   :  { %1012 = vsyncpa [#allocation7 + $0x1], 1 }

</bundles_post_ra>
